<compile_context>
chip_gen: v7x
topology: tpu7x:2x2x1
jax: 0.10.0
libtpu: 0.0.40
codegen_flags: <defaults>
</compile_context>

<pallas_src>
import jax
import jax.numpy as jnp
from jax import lax
from jax.experimental import pallas as pl
from jax.experimental.pallas import tpu as pltpu


_LANES = 128            # lane-dense last dim -> unmasked vector loads
_ROW_ALIGN = 16         # sublane alignment safe for both f32 (8) and bf16 (16)
_MAX_TILE_ROWS = 4096   # 4096 * 128 * 4 B = 2 MiB per input block


def _cdiv(a: int, b: int) -> int:
    return -(-a // b)


def _round_up(x: int, m: int) -> int:
    return _cdiv(x, m) * m


def _make_kld_kernel(rows, tile_rows, tiles_per_split, needs_mask):
    """Kernel factory; rows/tile geometry are compile-time Python ints."""
    r8 = (tile_rows // 8) * 8          # rows foldable into the (8,128) acc
    rem = tile_rows - r8               # leftover (<8) rows, single-tile only

    def kernel(mu_ref, lv_ref, acc_ref):
        split = pl.program_id(0)
        step = pl.program_id(1)

        @pl.when(step == 0)
        def _init():
            acc_ref[...] = jnp.zeros_like(acc_ref)

        # astype is a no-op for f32 inputs; it upcasts bf16 streams safely.
        mu = mu_ref[...].astype(jnp.float32)
        lv = lv_ref[...].astype(jnp.float32)
        # In-bounds elements; masked elements are zeroed explicitly below.
        term = mu * mu + jnp.exp(lv) - lv - 1.0

        if needs_mask:
            # Partial last block: OOB rows have undefined contents, so zero
            # their contribution.  Cheap VPU work; statically skipped when
            # the grid covers the array exactly.
            tile_start = (split * tiles_per_split + step) * tile_rows
            row_ids = lax.broadcasted_iota(jnp.int32, (tile_rows, _LANES), 0)
            term = jnp.where(row_ids < (rows - tile_start), term, 0.0)

        # Fold (tile_rows, 128) -> resident (8, 128) accumulator with pure
        # VPU adds (no XLU in the hot loop); the cross-lane reduction happens
        # in the wrapper epilogue.
        # TODO(synk): if a bundle dump ever shows `term` round-tripping
        # through VMEM, restructure as a lax.fori_loop over (8,128) chunks.
        if r8:
            acc_ref[...] += jnp.sum(term[:r8].reshape(-1, 8, _LANES), axis=0)
        if rem:
            acc_ref[0:rem, :] += term[r8:, :]

    return kernel


def _kld_bulk_sum(mu2d, lv2d, rows, *, num_cores, tile_rows_hint):
    """Sum of the KL term over a lane-dense (rows, 128) view via Pallas."""
    num_splits = max(1, min(int(num_cores), rows // _ROW_ALIGN))

    if tile_rows_hint is not None:
        t_rows = max(_ROW_ALIGN, _round_up(int(tile_rows_hint), _ROW_ALIGN))
    else:
        t_rows = min(_MAX_TILE_ROWS,
                     _round_up(_cdiv(rows, num_splits), _ROW_ALIGN))
    if num_splits == 1 and t_rows >= rows:
        t_rows = rows                      # one full-dims block, no masking

    tiles_per_split = _cdiv(rows, num_splits * t_rows)
    needs_mask = (num_splits * tiles_per_split * t_rows != rows)

    grid = (num_splits, tiles_per_split)
    in_spec = pl.BlockSpec(
        (t_rows, _LANES),
        lambda c, i: (c * tiles_per_split + i, 0),
    )
    # One resident (8, 128) accumulator block per split.
    out_spec = pl.BlockSpec((8, _LANES), lambda c, i: (c, 0))

    # Only CORE_PARALLEL actually shards a grid axis across TensorCores
    # (plain "parallel" has near-zero codegen impact); use it only when the
    # caller explicitly asks for a multi-core split (v7x).
    dim0 = pltpu.CORE_PARALLEL if num_splits > 1 else pltpu.ARBITRARY

    partials = pl.pallas_call(
        _make_kld_kernel(rows, t_rows, tiles_per_split, needs_mask),
        out_shape=jax.ShapeDtypeStruct((num_splits * 8, _LANES), jnp.float32),
        grid=grid,
        in_specs=[in_spec, in_spec],
        out_specs=out_spec,
        compiler_params=pltpu.CompilerParams(
            dimension_semantics=(dim0, pltpu.ARBITRARY),
            # ~8-10 MiB actually used with 2 MiB blocks double-buffered;
            # 32 MiB is above v5e's 16 MiB scoped default and leaves
            # headroom under v7x's 64 MiB physical VMEM.
            vmem_limit_bytes=32 * 1024 * 1024,
        ),
    )(mu2d, lv2d)

    return jnp.sum(partials)


def kld_loss(output_mu, output_logvar, weight=1.0, *, num_cores=1,
             tile_rows=None):
    """Pallas implementation of KLD_Loss.forward.  Returns an f32 scalar.

    num_cores: set to 2 on v7x (dual TensorCore) so the leading grid axis is
      CORE_PARALLEL and each TC streams half of the rows.  Keep 1 on v5e/v6e.
    tile_rows: optional row-tile override (rounded up to 16).
    """
    assert output_mu.shape == output_logvar.shape
    n_elems = output_mu.size

    mu_flat = output_mu.reshape(-1)
    lv_flat = output_logvar.reshape(-1)

    rows = n_elems // _LANES           # complete 128-lane rows
    tail = n_elems - rows * _LANES     # leftover elements (< 128)

    total = jnp.asarray(0.0, jnp.float32)

    if rows > 0:
        if tail:
            # Unaligned total: one bulk slice (copy of rows*128 elems) is
            # unavoidable without an in-kernel relayout, but it is far
            # cheaper than zero-padding both full arrays and never happens
            # for 128-aligned sizes (the common case).
            mu2d = mu_flat[: rows * _LANES].reshape(rows, _LANES)
            lv2d = lv_flat[: rows * _LANES].reshape(rows, _LANES)
        else:
            mu2d = mu_flat.reshape(rows, _LANES)   # pure bitcast, no copy
            lv2d = lv_flat.reshape(rows, _LANES)
        total = total + _kld_bulk_sum(mu2d, lv2d, rows,
                                      num_cores=num_cores,
                                      tile_rows_hint=tile_rows)

    if tail:
        # < 128 leftover elements: trivial XLA epilogue (fuses under jit).
        mu_t = mu_flat[rows * _LANES:].astype(jnp.float32)
        lv_t = lv_flat[rows * _LANES:].astype(jnp.float32)
        total = total + jnp.sum(mu_t * mu_t + jnp.exp(lv_t) - lv_t - 1.0)

    # weight stays outside the kernel: works for Python floats and traced
    # scalars alike, and never forces a kernel recompile.
    return weight * (0.5 * total)


def kld_loss_ref(output_mu, output_logvar, weight=1.0):
    mu = output_mu.astype(jnp.float32)
    lv = output_logvar.astype(jnp.float32)
    return weight * 0.5 * jnp.sum(-1.0 - lv + mu * mu + jnp.exp(lv))


if __name__ == "__main__":
    # jit so the reshape / tail / epilogue ops fuse around the pallas_call.
    kld = jax.jit(kld_loss, static_argnames=("num_cores", "tile_rows"))

    # Primary check: small VAE-style latents (batch=4, latent=256 -> 8 rows).
    k_mu, k_lv = jax.random.split(jax.random.PRNGKey(0))
    output_mu = jax.random.normal(k_mu, (4, 256), dtype=jnp.float32)
    output_logvar = jax.random.normal(k_lv, (4, 256), dtype=jnp.float32)
    out = jax.block_until_ready(kld(output_mu, output_logvar, 1.0))
    ref = kld_loss_ref(output_mu, output_logvar, 1.0)
    assert jnp.allclose(out, ref, rtol=1e-4, atol=1e-3), (out, ref)

    # Non-multiple-of-8 row count, zero copies (16*400 = 50 full rows).
    k2 = jax.random.split(jax.random.PRNGKey(1))
    mu2 = jax.random.normal(k2[0], (16, 400), dtype=jnp.float32)
    lv2 = jax.random.normal(k2[1], (16, 400), dtype=jnp.float32)
    out2 = jax.block_until_ready(kld(mu2, lv2, 0.7))
    ref2 = kld_loss_ref(mu2, lv2, 0.7)
    assert jnp.allclose(out2, ref2, rtol=1e-4, atol=1e-3), (out2, ref2)

    # Multi-step accumulation with a masked partial last tile (50 rows / 16).
    out3 = jax.block_until_ready(kld(mu2, lv2, 0.7, tile_rows=16))
    assert jnp.allclose(out3, ref2, rtol=1e-4, atol=1e-3), (out3, ref2)

    # Total not a multiple of 128: bulk kernel + tiny XLA tail, traced weight.
    k3 = jax.random.split(jax.random.PRNGKey(2))
    mu3 = jax.random.normal(k3[0], (8, 177), dtype=jnp.float32)   # 1416 elems
    lv3 = jax.random.normal(k3[1], (8, 177), dtype=jnp.float32)
    out4 = jax.block_until_ready(kld(mu3, lv3, jnp.float32(1.3)))
    ref4 = kld_loss_ref(mu3, lv3, 1.3)
    assert jnp.allclose(out4, ref4, rtol=1e-4, atol=1e-3), (out4, ref4)

    # bf16 streaming inputs (halved HBM traffic; accumulation stays f32).
    mu4 = jax.random.normal(k_mu, (64, 128), dtype=jnp.bfloat16)
    lv4 = jax.random.normal(k_lv, (64, 128), dtype=jnp.bfloat16)
    out5 = jax.block_until_ready(kld(mu4, lv4, 1.0))
    ref5 = kld_loss_ref(mu4, lv4, 1.0)
    assert jnp.allclose(out5, ref5, rtol=1e-4, atol=1e-3), (out5, ref5)

    print("KERNEL_OK")
</pallas_src>

<mosaic_0001>
module attributes {stable_mosaic.version = 11 : i64} {
  func.func @kernel(%arg0: i32, %arg1: i32, %arg2: memref<8x128xf32, #tpu.memory_space<vmem>>, %arg3: memref<8x128xf32, #tpu.memory_space<vmem>>, %arg4: memref<8x128xf32, #tpu.memory_space<vmem>>) attributes {dimension_semantics = [#tpu.dimension_semantics<arbitrary>, #tpu.dimension_semantics<arbitrary>], iteration_bounds = array<i64: 1, 1>, scalar_prefetch = 0 : i64, scratch_operands = 0 : i64, tpu.core_type = #tpu.core_type<tc>, window_params = [{transform_indices = @transform_0, window_bounds = array<i64: 8, 128>}, {transform_indices = @transform_1, window_bounds = array<i64: 8, 128>}, {transform_indices = @transform_2, window_bounds = array<i64: 8, 128>}]} {
    %c0_i32 = arith.constant 0 : i32
    %0 = arith.cmpi eq, %arg1, %c0_i32 : i32
    %1 = arith.extui %0 : i1 to i32
    %c0_i32_0 = arith.constant 0 : i32
    %2 = arith.cmpi ne, %1, %c0_i32_0 : i32
    scf.if %2 {
      %cst_9 = arith.constant 0.000000e+00 : f32
      %16 = vector.broadcast %cst_9 : f32 to vector<8x128xf32>
      %c0_10 = arith.constant 0 : index
      %c0_11 = arith.constant 0 : index
      %17 = vector.load %arg4[%c0_10, %c0_11] : memref<8x128xf32, #tpu.memory_space<vmem>>, vector<8x128xf32>
      tpu.vector_store %arg4[%c0_10, %c0_11], %16 {strides = array<i32>} : memref<8x128xf32, #tpu.memory_space<vmem>>, vector<8x128xf32>,
    } else {
    }
    %c0 = arith.constant 0 : index
    %c0_1 = arith.constant 0 : index
    %3 = vector.load %arg2[%c0, %c0_1] : memref<8x128xf32, #tpu.memory_space<vmem>>, vector<8x128xf32>
    %c0_2 = arith.constant 0 : index
    %c0_3 = arith.constant 0 : index
    %4 = vector.load %arg3[%c0_2, %c0_3] : memref<8x128xf32, #tpu.memory_space<vmem>>, vector<8x128xf32>
    %5 = arith.mulf %3, %3 : vector<8x128xf32>
    %6 = math.exp %4 : vector<8x128xf32>
    %7 = arith.addf %5, %6 : vector<8x128xf32>
    %8 = arith.subf %7, %4 : vector<8x128xf32>
    %cst = arith.constant 1.000000e+00 : f32
    %9 = vector.broadcast %cst : f32 to vector<8x128xf32>
    %10 = arith.subf %8, %9 : vector<8x128xf32>
    %c0_4 = arith.constant 0 : index
    %c0_5 = arith.constant 0 : index
    %11 = vector.load %arg4[%c0_4, %c0_5] : memref<8x128xf32, #tpu.memory_space<vmem>>, vector<8x128xf32>
    %12 = vector.shape_cast %10 : vector<8x128xf32> to vector<1x8x128xf32>
    %cst_6 = arith.constant dense<0.000000e+00> : vector<8x128xf32>
    %13 = vector.multi_reduction <add>, %12, %cst_6 [0] : vector<1x8x128xf32> to vector<8x128xf32>
    %14 = arith.addf %11, %13 : vector<8x128xf32>
    %c0_7 = arith.constant 0 : index
    %c0_8 = arith.constant 0 : index
    %15 = vector.load %arg4[%c0_7, %c0_8] : memref<8x128xf32, #tpu.memory_space<vmem>>, vector<8x128xf32>
    tpu.vector_store %arg4[%c0_7, %c0_8], %14 {strides = array<i32>} : memref<8x128xf32, #tpu.memory_space<vmem>>, vector<8x128xf32>,
    return
  }
  func.func @transform_0(%arg0: i32, %arg1: i32) -> (i32, i32) {
    %c1_i32 = arith.constant 1 : i32
    %0 = arith.muli %arg0, %c1_i32 : i32
    %1 = arith.addi %0, %arg1 : i32
    %c0_i32 = arith.constant 0 : i32
    %c0_i32_0 = arith.constant 0 : i32
    return %1, %c0_i32 : i32, i32
  }
  func.func @transform_1(%arg0: i32, %arg1: i32) -> (i32, i32) {
    %c1_i32 = arith.constant 1 : i32
    %0 = arith.muli %arg0, %c1_i32 : i32
    %1 = arith.addi %0, %arg1 : i32
    %c0_i32 = arith.constant 0 : i32
    %c0_i32_0 = arith.constant 0 : i32
    return %1, %c0_i32 : i32, i32
  }
  func.func @transform_2(%arg0: i32, %arg1: i32) -> (i32, i32) {
    %c0_i32 = arith.constant 0 : i32
    %c0_i32_0 = arith.constant 0 : i32
    return %arg0, %c0_i32 : i32, i32
  }
}

</mosaic_0001>

<bundles_post_ra>
// kernel: kld_loss.1
= control target key start
LH: loop header
LB: loop body
LE: loop exit
PB: predicated region body
PF: predicated region fallthrough
CT: control target
= control target key end

     0   :  { %s106_s1 = inlined_call_operand.vmem [shape: f32[8,128], index: 1, kind: input, shape index: {}]   ;;  %s107_s0 = inlined_call_operand.vmem [shape: f32[8,128], index: 0, kind: input, shape index: {}]   ;;  %s108_s2 = inlined_call_operand.vmem [shape: f32[8,128], index: 2, kind: output, shape index: {}]  }
   0x1   :  { %v51_v0 = vld [vmem:[%s106_s1] sm:$0xff] }
   0x2   :  { %v53_v1 = vmul.f32 1.442695, %v51_v0  ;;  %v50_v2 = vld [vmem:[%s107_s0] sm:$0xff] }
   0x3   :  { %v52_v3 = vmul.f32 %v50_v2, %v50_v2 }
   0x4   :  { %80 = vpow2.f32 %v53_v1 }
   0xe   :  { %v81_v4 = vpop.eup %80 }
   0xf   :  { %v55_v5 = vadd.f32 %v81_v4, %v52_v3 }
  0x11   :  { %v56_v6 = vsub.f32 %v55_v5, %v51_v0 }
  0x13   :  { %v78_v7 = vadd.f32 -1.0, %v56_v6 }
  0x15   :  { %61 = vst [vmem:[%s108_s2] sm:$0xff] %v78_v7 }

</bundles_post_ra>
